<compile_context>
chip_gen: v6e
topology: v6e:2x2x1
jax: 0.10.0
libtpu: 0.0.40
codegen_flags: <defaults>
</compile_context>

<pallas_src>
import jax
import jax.numpy as jnp
from jax.experimental import pallas as pl
from jax.experimental.pallas import tpu as pltpu


def _round_up(x, m):
    return (x + m - 1) // m * m


def qfunction_kernel(obs_ref, act_ref,
                     w1o_ref, w1a_ref, b1_ref,
                     w2_ref, b2_ref,
                     w3_ref, b3_ref,
                     out_ref):
    # Feature-major activations: obs_ref (obs_dim, TM), act_ref (action_dim, TM).
    # Layer 1: split matmul (concat eliminated) -- two MXU pushes, one f32 acc.
    h1 = jnp.dot(w1o_ref[...], obs_ref[...], preferred_element_type=jnp.float32)
    h1 = h1 + jnp.dot(w1a_ref[...], act_ref[...],
                      preferred_element_type=jnp.float32)
    h1 = jnp.maximum(h1 + b1_ref[...], 0.0)                    # (H_pad, TM)

    # Layer 2: full (H_pad x H_pad) @ (H_pad x TM) MXU matmul.
    h2 = jnp.dot(w2_ref[...], h1, preferred_element_type=jnp.float32)
    h2 = jnp.maximum(h2 + b2_ref[...], 0.0)                    # (H_pad, TM)

    # Layer 3 (out_features = 1): VPU multiply + sublane reduction instead of
    # an N=1 MXU matmul. Result (1, TM) is lane-dense; b3 read from SMEM.
    q = jnp.sum(h2 * w3_ref[...], axis=0, keepdims=True) + b3_ref[0]
    out_ref[...] = q.reshape(out_ref.shape)                    # (1, 1, TM)


def qfunction_forward(obs, action, params, *, tm=128):
    """Pallas forward. obs: (B, obs_dim), action: (B, action_dim) -> (B, 1)."""
    W1, b1, W2, b2, W3, b3 = params        # PyTorch Linear layouts
    B, obs_dim = obs.shape
    Ba, action_dim = action.shape
    assert B == Ba
    hidden = W1.shape[0]
    h_pad = _round_up(hidden, 128)
    b_pad = _round_up(B, tm)
    n_tiles = b_pad // tm
    f32 = jnp.float32

    # Feature-major, batch-padded activations (one fused pad+transpose copy).
    obs_t = jnp.zeros((obs_dim, b_pad), f32).at[:, :B].set(obs.T.astype(f32))
    act_t = jnp.zeros((action_dim, b_pad), f32).at[:, :B].set(action.T.astype(f32))

    # Weights in feature-major layout, hidden padded to 128 (zero-padded once).
    # W1 is pre-sliced into obs / action halves: the kernel never concatenates.
    w1o = jnp.zeros((h_pad, obs_dim), f32).at[:hidden, :].set(W1[:, :obs_dim])
    w1a = jnp.zeros((h_pad, action_dim), f32).at[:hidden, :].set(W1[:, obs_dim:])
    b1p = jnp.zeros((h_pad, 1), f32).at[:hidden, 0].set(b1)
    w2p = jnp.zeros((h_pad, h_pad), f32).at[:hidden, :hidden].set(W2)
    b2p = jnp.zeros((h_pad, 1), f32).at[:hidden, 0].set(b2)
    w3p = jnp.zeros((h_pad, 1), f32).at[:hidden, 0].set(W3[0])
    b3p = jnp.reshape(b3, (1,)).astype(f32)

    def const_spec(shape):
        zeros = (0,) * len(shape)
        return pl.BlockSpec(shape, lambda i, _z=zeros: _z)

    def batch_spec(feat):
        return pl.BlockSpec((feat, tm), lambda i: (0, i))

    out = pl.pallas_call(
        qfunction_kernel,
        out_shape=jax.ShapeDtypeStruct((n_tiles, 1, tm), f32),
        grid=(n_tiles,),
        in_specs=[
            batch_spec(obs_dim),
            batch_spec(action_dim),
            const_spec(w1o.shape), const_spec(w1a.shape), const_spec(b1p.shape),
            const_spec(w2p.shape), const_spec(b2p.shape),
            const_spec(w3p.shape),
            pl.BlockSpec(memory_space=pltpu.MemorySpace.SMEM),   # b3 scalar
        ],
        out_specs=pl.BlockSpec((1, 1, tm), lambda i: (i, 0, 0)),
        compiler_params=pltpu.CompilerParams(
            dimension_semantics=("parallel",),
        ),
    )(obs_t, act_t, w1o, w1a, b1p, w2p, b2p, w3p, b3p)

    # Lane-dense (n_tiles, 1, TM) -> (B, 1): pure layout plumbing.
    return out.reshape(b_pad, 1)[:B]


def init_params(key, obs_dim, action_dim, hidden_dim):
    """Deterministic synthetic params in PyTorch nn.Linear layout."""
    in_dim = obs_dim + action_dim
    ks = jax.random.split(key, 6)
    W1 = jax.random.normal(ks[0], (hidden_dim, in_dim), jnp.float32) * 0.1
    b1 = jax.random.normal(ks[1], (hidden_dim,), jnp.float32) * 0.1
    W2 = jax.random.normal(ks[2], (hidden_dim, hidden_dim), jnp.float32) * 0.1
    b2 = jax.random.normal(ks[3], (hidden_dim,), jnp.float32) * 0.1
    W3 = jax.random.normal(ks[4], (1, hidden_dim), jnp.float32) * 0.1
    b3 = jax.random.normal(ks[5], (1,), jnp.float32) * 0.1
    return (W1, b1, W2, b2, W3, b3)


def qfunction_ref(obs, action, params):
    """Pure-JAX reference matching the PyTorch forward."""
    W1, b1, W2, b2, W3, b3 = params
    x = jnp.concatenate([obs, action], axis=1)
    h1 = jnp.maximum(x @ W1.T + b1, 0.0)
    h2 = jnp.maximum(h1 @ W2.T + b2, 0.0)
    return h2 @ W3.T + b3


if __name__ == "__main__":
    B, obs_dim, action_dim, hidden_dim = 8, 16, 8, 32

    key = jax.random.PRNGKey(0)
    k_obs, k_act, k_par = jax.random.split(key, 3)
    obs = jax.random.normal(k_obs, (B, obs_dim), jnp.float32)
    action = jax.random.normal(k_act, (B, action_dim), jnp.float32)
    params = init_params(k_par, obs_dim, action_dim, hidden_dim)

    fwd = jax.jit(qfunction_forward)
    q = jax.block_until_ready(fwd(obs, action, params))

    q_ref = qfunction_ref(obs, action, params)
    assert q.shape == (B, 1)
    assert jnp.allclose(q, q_ref, atol=1e-4, rtol=1e-4), "mismatch vs reference"

    print("KERNEL_OK")
</pallas_src>

<mosaic_0001>
module attributes {stable_mosaic.version = 11 : i64} {
  func.func @qfunction_kernel(%arg0: i32, %arg1: memref<16x128xf32, #tpu.memory_space<vmem>>, %arg2: memref<8x128xf32, #tpu.memory_space<vmem>>, %arg3: memref<128x16xf32, #tpu.memory_space<vmem>>, %arg4: memref<128x8xf32, #tpu.memory_space<vmem>>, %arg5: memref<128x1xf32, #tpu.memory_space<vmem>>, %arg6: memref<128x128xf32, #tpu.memory_space<vmem>>, %arg7: memref<128x1xf32, #tpu.memory_space<vmem>>, %arg8: memref<128x1xf32, #tpu.memory_space<vmem>>, %arg9: memref<1xf32, #tpu.memory_space<smem>>, %arg10: memref<1x1x128xf32, #tpu.memory_space<vmem>>) attributes {dimension_semantics = [#tpu.dimension_semantics<parallel>], iteration_bounds = array<i64: 1>, scalar_prefetch = 0 : i64, scratch_operands = 0 : i64, tpu.core_type = #tpu.core_type<tc>, window_params = [{transform_indices = @transform_0, window_bounds = array<i64: 16, 128>}, {transform_indices = @transform_1, window_bounds = array<i64: 8, 128>}, {pipeline_mode = #tpu.pipeline_mode<synchronous>, transform_indices = @transform_2, window_bounds = array<i64: 128, 16>}, {pipeline_mode = #tpu.pipeline_mode<synchronous>, transform_indices = @transform_3, window_bounds = array<i64: 128, 8>}, {pipeline_mode = #tpu.pipeline_mode<synchronous>, transform_indices = @transform_4, window_bounds = array<i64: 128, 1>}, {pipeline_mode = #tpu.pipeline_mode<synchronous>, transform_indices = @transform_5, window_bounds = array<i64: 128, 128>}, {pipeline_mode = #tpu.pipeline_mode<synchronous>, transform_indices = @transform_6, window_bounds = array<i64: 128, 1>}, {pipeline_mode = #tpu.pipeline_mode<synchronous>, transform_indices = @transform_7, window_bounds = array<i64: 128, 1>}, {transform_indices = @transform_8, window_bounds = array<i64: 1>}, {transform_indices = @transform_9, window_bounds = array<i64: 1, 1, 128>}]} {
    %c0 = arith.constant 0 : index
    %c0_0 = arith.constant 0 : index
    %0 = vector.load %arg3[%c0, %c0_0] : memref<128x16xf32, #tpu.memory_space<vmem>>, vector<128x16xf32>
    %c0_1 = arith.constant 0 : index
    %c0_2 = arith.constant 0 : index
    %1 = vector.load %arg1[%c0_1, %c0_2] : memref<16x128xf32, #tpu.memory_space<vmem>>, vector<16x128xf32>
    %cst = arith.constant dense<0.000000e+00> : vector<128x128xf32>
    %2 = tpu.matmul %0, %1, %cst {dimension_numbers = #tpu.dot_dimension_numbers<[1], [0], [0], [1], [0, 0, 1, 1], [], []>} : vector<128x16xf32>, vector<16x128xf32>, vector<128x128xf32> -> vector<128x128xf32>
    %c0_3 = arith.constant 0 : index
    %c0_4 = arith.constant 0 : index
    %3 = vector.load %arg4[%c0_3, %c0_4] : memref<128x8xf32, #tpu.memory_space<vmem>>, vector<128x8xf32>
    %c0_5 = arith.constant 0 : index
    %c0_6 = arith.constant 0 : index
    %4 = vector.load %arg2[%c0_5, %c0_6] : memref<8x128xf32, #tpu.memory_space<vmem>>, vector<8x128xf32>
    %cst_7 = arith.constant dense<0.000000e+00> : vector<128x128xf32>
    %5 = tpu.matmul %3, %4, %cst_7 {dimension_numbers = #tpu.dot_dimension_numbers<[1], [0], [0], [1], [0, 0, 1, 1], [], []>} : vector<128x8xf32>, vector<8x128xf32>, vector<128x128xf32> -> vector<128x128xf32>
    %6 = arith.addf %2, %5 : vector<128x128xf32>
    %c0_8 = arith.constant 0 : index
    %c0_9 = arith.constant 0 : index
    %7 = vector.load %arg5[%c0_8, %c0_9] : memref<128x1xf32, #tpu.memory_space<vmem>>, vector<128x1xf32>
    %8 = vector.broadcast %7 : vector<128x1xf32> to vector<128x128xf32>
    %9 = arith.addf %6, %8 : vector<128x128xf32>
    %cst_10 = arith.constant 0.000000e+00 : f32
    %10 = vector.broadcast %cst_10 : f32 to vector<128x128xf32>
    %11 = arith.maximumf %9, %10 : vector<128x128xf32>
    %c0_11 = arith.constant 0 : index
    %c0_12 = arith.constant 0 : index
    %12 = vector.load %arg6[%c0_11, %c0_12] : memref<128x128xf32, #tpu.memory_space<vmem>>, vector<128x128xf32>
    %cst_13 = arith.constant dense<0.000000e+00> : vector<128x128xf32>
    %13 = tpu.matmul %12, %11, %cst_13 {dimension_numbers = #tpu.dot_dimension_numbers<[1], [0], [0], [1], [0, 0, 1, 1], [], []>} : vector<128x128xf32>, vector<128x128xf32>, vector<128x128xf32> -> vector<128x128xf32>
    %c0_14 = arith.constant 0 : index
    %c0_15 = arith.constant 0 : index
    %14 = vector.load %arg7[%c0_14, %c0_15] : memref<128x1xf32, #tpu.memory_space<vmem>>, vector<128x1xf32>
    %15 = vector.broadcast %14 : vector<128x1xf32> to vector<128x128xf32>
    %16 = arith.addf %13, %15 : vector<128x128xf32>
    %cst_16 = arith.constant 0.000000e+00 : f32
    %17 = vector.broadcast %cst_16 : f32 to vector<128x128xf32>
    %18 = arith.maximumf %16, %17 : vector<128x128xf32>
    %c0_17 = arith.constant 0 : index
    %c0_18 = arith.constant 0 : index
    %19 = vector.load %arg8[%c0_17, %c0_18] : memref<128x1xf32, #tpu.memory_space<vmem>>, vector<128x1xf32>
    %20 = vector.broadcast %19 : vector<128x1xf32> to vector<128x128xf32>
    %21 = arith.mulf %18, %20 : vector<128x128xf32>
    %cst_19 = arith.constant dense<0.000000e+00> : vector<128xf32>
    %22 = vector.multi_reduction <add>, %21, %cst_19 [0] : vector<128x128xf32> to vector<128xf32>
    %23 = vector.shape_cast %22 : vector<128xf32> to vector<1x128xf32>
    %c0_20 = arith.constant 0 : index
    %24 = memref.load %arg9[%c0_20] : memref<1xf32, #tpu.memory_space<smem>>
    %25 = vector.broadcast %24 : f32 to vector<1x128xf32>
    %26 = arith.addf %23, %25 : vector<1x128xf32>
    %27 = vector.shape_cast %26 : vector<1x128xf32> to vector<1x1x128xf32>
    %c0_21 = arith.constant 0 : index
    %c0_22 = arith.constant 0 : index
    %c0_23 = arith.constant 0 : index
    %28 = vector.load %arg10[%c0_21, %c0_22, %c0_23] : memref<1x1x128xf32, #tpu.memory_space<vmem>>, vector<1x1x128xf32>
    tpu.vector_store %arg10[%c0_21, %c0_22, %c0_23], %27 {strides = array<i32>} : memref<1x1x128xf32, #tpu.memory_space<vmem>>, vector<1x1x128xf32>,
    return
  }
  func.func @transform_0(%arg0: i32) -> (i32, i32) {
    %c0_i32 = arith.constant 0 : i32
    %c0_i32_0 = arith.constant 0 : i32
    return %c0_i32, %arg0 : i32, i32
  }
  func.func @transform_1(%arg0: i32) -> (i32, i32) {
    %c0_i32 = arith.constant 0 : i32
    %c0_i32_0 = arith.constant 0 : i32
    return %c0_i32, %arg0 : i32, i32
  }
  func.func @transform_2(%arg0: i32) -> (i32, i32) {
    %c0_i32 = arith.constant 0 : i32
    %c0_i32_0 = arith.constant 0 : i32
    %c0_i32_1 = arith.constant 0 : i32
    return %c0_i32, %c0_i32_0 : i32, i32
  }
  func.func @transform_3(%arg0: i32) -> (i32, i32) {
    %c0_i32 = arith.constant 0 : i32
    %c0_i32_0 = arith.constant 0 : i32
    %c0_i32_1 = arith.constant 0 : i32
    return %c0_i32, %c0_i32_0 : i32, i32
  }
  func.func @transform_4(%arg0: i32) -> (i32, i32) {
    %c0_i32 = arith.constant 0 : i32
    %c0_i32_0 = arith.constant 0 : i32
    %c0_i32_1 = arith.constant 0 : i32
    return %c0_i32, %c0_i32_0 : i32, i32
  }
  func.func @transform_5(%arg0: i32) -> (i32, i32) {
    %c0_i32 = arith.constant 0 : i32
    %c0_i32_0 = arith.constant 0 : i32
    %c0_i32_1 = arith.constant 0 : i32
    return %c0_i32, %c0_i32_0 : i32, i32
  }
  func.func @transform_6(%arg0: i32) -> (i32, i32) {
    %c0_i32 = arith.constant 0 : i32
    %c0_i32_0 = arith.constant 0 : i32
    %c0_i32_1 = arith.constant 0 : i32
    return %c0_i32, %c0_i32_0 : i32, i32
  }
  func.func @transform_7(%arg0: i32) -> (i32, i32) {
    %c0_i32 = arith.constant 0 : i32
    %c0_i32_0 = arith.constant 0 : i32
    %c0_i32_1 = arith.constant 0 : i32
    return %c0_i32, %c0_i32_0 : i32, i32
  }
  func.func @transform_8(%arg0: i32) -> i32 {
    %c0_i32 = arith.constant 0 : i32
    %c0_i32_0 = arith.constant 0 : i32
    return %c0_i32 : i32
  }
  func.func @transform_9(%arg0: i32) -> (i32, i32, i32) {
    %c0_i32 = arith.constant 0 : i32
    %c0_i32_0 = arith.constant 0 : i32
    %c0_i32_1 = arith.constant 0 : i32
    return %arg0, %c0_i32, %c0_i32_0 : i32, i32, i32
  }
}

</mosaic_0001>

<bundles_post_ra>
// kernel: qfunction_forward.1
= control target key start
LH: loop header
LB: loop body
LE: loop exit
PB: predicated region body
PF: predicated region fallthrough
CT: control target
= control target key end

     0   :  { %vm68_vm0 = vcmask 64512   ;;  %v1242_v3 = vmov 0   ;;  %vm262_vm1 = vcmask 130048   ;;  %s1667_s1 = inlined_call_operand.vmem [shape: f32[8,128], index: 1, kind: input, shape index: {}]   ;;  %s1668_s0 = inlined_call_operand.vmem [shape: f32[16,128], index: 0, kind: input, shape index: {}]   ;;  %s1669_s3 = inlined_call_operand.vmem [shape: f32[128,8], index: 3, kind: input, shape index: {}]   ;;  %s1670_s2 = inlined_call_operand.vmem [shape: f32[128,16], index: 2, kind: input, shape index: {}]   ;;  %s1671_s4 = inlined_call_operand.vmem [shape: f32[128,1], index: 4, kind: input, shape index: {}]   ;;  %s1672_s6 = inlined_call_operand.vmem [shape: f32[128,1], index: 6, kind: input, shape index: {}]   ;;  %s1673_s7 = inlined_call_operand.vmem [shape: f32[128,1], index: 7, kind: input, shape index: {}]   ;;  %s1674_s5 = inlined_call_operand.vmem [shape: f32[128,128], index: 5, kind: input, shape index: {}]   ;;  %s1675_s8 = inlined_call_operand.<no memory space> [shape: f32[1], index: 8, kind: input, shape index: {}]   ;;  %s1676_s9 = inlined_call_operand.vmem [shape: f32[1,1,128], index: 9, kind: output, shape index: {}]  }
   0x1   :  { %v67_v0 = vld [vmem:[%s1667_s1] sm:$0xff]  ;;  %v50_v1 = vld [vmem:[%s1668_s0 + $0x8] sm:$0xff]  ;;  %1240 = vset.pattern.permute.xlu0 %v1242_v3  ;;  %1241 = vset.pattern.permute.xlu1 %v1242_v3  ;;  %v53_v7 = vld [vmem:[%s1669_s3 + $0x10] sm:$0xff] }
   0x2   :  { %v51_v2 = vld [vmem:[%s1669_s3] sm:$0xff]  ;;  %1097 = vmatprep.subr.mxu0 %v67_v0  ;;  %1123 = vmatprep.subr.mxu1 %v50_v1  ;;  %v52_v4 = vld [vmem:[%s1669_s3 + $0x8] sm:$0xff]  ;;  %v471_v9 = vld [vmem:[%s1671_s4 + $0x78] sm:$0xff] }
   0x3   :  { %v49_v5 = vld [vmem:[%s1668_s0] sm:$0xff]  ;;  %1098 = vmatpush3.msra.mxu0 %v67_v0  ;;  %1099 = vmatprep.mubr.msk.f32.mxu0 %vm68_vm0, %v51_v2  ;;  %v34_v8 = vld [vmem:[%s1670_s2 + $0x8] sm:$0xff]  ;;  %v54_v10 = vld [vmem:[%s1669_s3 + $0x18] sm:$0xff] }
   0x4   :  { %v33_v6 = vld [vmem:[%s1670_s2] sm:$0xff]  ;;  %1124 = vmatpush3.msra.mxu1 %v50_v1  ;;  %1100 = vmatmul.mubr.msk.f32.vlgmr.msra.gmra.mxu0 %vm68_vm0, %v52_v4  ;;  %v35_v11 = vld [vmem:[%s1670_s2 + $0x10] sm:$0xff]  ;;  %v469_v13 = vld [vmem:[%s1671_s4 + $0x68] sm:$0xff] }
   0x5   :  { %1125 = vmatprep.subr.mxu1 %v49_v5  ;;  %1127 = vmatprep.mubr.msk.f32.mxu1 %vm262_vm1, %v33_v6  ;;  %v55_v12 = vld [vmem:[%s1669_s3 + $0x20] sm:$0xff]  ;;  %v36_v14 = vld [vmem:[%s1670_s2 + $0x18] sm:$0xff]  ;;  %v470_v15 = vld [vmem:[%s1671_s4 + $0x70] sm:$0xff] }
   0x6   :  { %1126 = vmatpush3.msra.mxu1 %v49_v5  ;;  %1102 = vmatprep.mubr.msk.f32.mxu0 %vm68_vm0, %v53_v7  ;;  %v56_v16 = vld [vmem:[%s1669_s3 + $0x28] sm:$0xff]  ;;  %v37_v17 = vld [vmem:[%s1670_s2 + $0x20] sm:$0xff]  ;;  %v57_v18 = vld [vmem:[%s1669_s3 + $0x30] sm:$0xff] }
   0x7   :  { %1128 = vmatmul.mubr.msk.f32.vlgmr.msra.gmra.mxu1 %vm262_vm1, %v34_v8  ;;  %549 = vperm.xlu0 %1240, %v471_v9   ;;  %v468_v19 = vld [vmem:[%s1671_s4 + $0x60] sm:$0xff]  ;;  %v38_v20 = vld [vmem:[%s1670_s2 + $0x28] sm:$0xff]  ;;  %v467_v21 = vld [vmem:[%s1671_s4 + $0x58] sm:$0xff] }
   0x8   :  { %1103 = vmatmul.mubr.msk.f32.gmra.mxu0 %vm68_vm0, %v54_v10  ;;  %1130 = vmatprep.mubr.msk.f32.mxu1 %vm262_vm1, %v35_v11  ;;  %v58_v22 = vld [vmem:[%s1669_s3 + $0x38] sm:$0xff]  ;;  %v39_v23 = vld [vmem:[%s1670_s2 + $0x30] sm:$0xff]  ;;  %v59_v24 = vld [vmem:[%s1669_s3 + $0x40] sm:$0xff] }
   0x9   :  { %1105 = vmatprep.mubr.msk.f32.mxu0 %vm68_vm0, %v55_v12  ;;  %539 = vperm.xlu1 %1241, %v469_v13   ;;  %v466_v25 = vld [vmem:[%s1671_s4 + $0x50] sm:$0xff]  ;;  %v40_v26 = vld [vmem:[%s1670_s2 + $0x38] sm:$0xff]  ;;  %v465_v27 = vld [vmem:[%s1671_s4 + $0x48] sm:$0xff] }
   0xa   :  { %v60_v28 = vld [vmem:[%s1669_s3 + $0x48] sm:$0xff]  ;;  %v41_v29 = vld [vmem:[%s1670_s2 + $0x40] sm:$0xff]  ;;  %v61_v30 = vld [vmem:[%s1669_s3 + $0x50] sm:$0xff] }
   0xb   :  { %1131 = vmatmul.mubr.msk.f32.gmra.mxu1 %vm262_vm1, %v36_v14  ;;  %544 = vperm.xlu0 %1240, %v470_v15   ;;  %v464_v31 = vld [vmem:[%s1671_s4 + $0x40] sm:$0xff]  ;;  %v42_v32 = vld [vmem:[%s1670_s2 + $0x48] sm:$0xff]  ;;  %v463_v33 = vld [vmem:[%s1671_s4 + $0x38] sm:$0xff] }
   0xc   :  { %1106 = vmatmul.mubr.msk.f32.gmra.mxu0 %vm68_vm0, %v56_v16  ;;  %1133 = vmatprep.mubr.msk.f32.mxu1 %vm262_vm1, %v37_v17  ;;  %v62_v34 = vld [vmem:[%s1669_s3 + $0x58] sm:$0xff]  ;;  %v43_v35 = vld [vmem:[%s1670_s2 + $0x50] sm:$0xff]  ;;  %v63_v36 = vld [vmem:[%s1669_s3 + $0x60] sm:$0xff] }
   0xd   :  { %1108 = vmatprep.mubr.msk.f32.mxu0 %vm68_vm0, %v57_v18  ;;  %534 = vperm.xlu1 %1241, %v468_v19   ;;  %v462_v37 = vld [vmem:[%s1671_s4 + $0x30] sm:$0xff]  ;;  %v44_v38 = vld [vmem:[%s1670_s2 + $0x58] sm:$0xff]  ;;  %v461_v39 = vld [vmem:[%s1671_s4 + $0x28] sm:$0xff] }
   0xe   :  { %v64_v40 = vld [vmem:[%s1669_s3 + $0x68] sm:$0xff]  ;;  %v45_v41 = vld [vmem:[%s1670_s2 + $0x60] sm:$0xff]  ;;  %v65_v42 = vld [vmem:[%s1669_s3 + $0x70] sm:$0xff] }
   0xf   :  { %1134 = vmatmul.mubr.msk.f32.gmra.mxu1 %vm262_vm1, %v38_v20  ;;  %529 = vperm.xlu0 %1240, %v467_v21   ;;  %v460_v43 = vld [vmem:[%s1671_s4 + $0x20] sm:$0xff]  ;;  %v46_v44 = vld [vmem:[%s1670_s2 + $0x68] sm:$0xff]  ;;  %v459_v45 = vld [vmem:[%s1671_s4 + $0x18] sm:$0xff] }
  0x10   :  { %1109 = vmatmul.mubr.msk.f32.gmra.mxu0 %vm68_vm0, %v58_v22  ;;  %1136 = vmatprep.mubr.msk.f32.mxu1 %vm262_vm1, %v39_v23  ;;  %v66_v46 = vld [vmem:[%s1669_s3 + $0x78] sm:$0xff]  ;;  %v47_v47 = vld [vmem:[%s1670_s2 + $0x70] sm:$0xff]  ;;  %v457_v50 = vld [vmem:[%s1671_s4 + $0x8] sm:$0xff] }
  0x11   :  { %1111 = vmatprep.mubr.msk.f32.mxu0 %vm68_vm0, %v59_v24  ;;  %524 = vperm.xlu1 %1241, %v466_v25   ;;  %v458_v48 = vld [vmem:[%s1671_s4 + $0x10] sm:$0xff]  ;;  %v48_v49 = vld [vmem:[%s1670_s2 + $0x78] sm:$0xff]  ;;  %v456_v51 = vld [vmem:[%s1671_s4] sm:$0xff] }
  0x12   :  { %v600_v52 = vld [vmem:[%s1672_s6] sm:$0xff]  ;;  %v601_v53 = vld [vmem:[%s1672_s6 + $0x8] sm:$0xff]  ;;  %v602_v54 = vld [vmem:[%s1672_s6 + $0x10] sm:$0xff] }
  0x13   :  { %1137 = vmatmul.mubr.msk.f32.gmra.mxu1 %vm262_vm1, %v40_v26  ;;  %519 = vperm.xlu0 %1240, %v465_v27   ;;  %v603_v55 = vld [vmem:[%s1672_s6 + $0x18] sm:$0xff]  ;;  %v604_v56 = vld [vmem:[%s1672_s6 + $0x20] sm:$0xff]  ;;  %v858_v58 = vld [vmem:[%s1673_s7 + $0x8] sm:$0xff] }
  0x14   :  { %1112 = vmatmul.mubr.msk.f32.gmra.mxu0 %vm68_vm0, %v60_v28  ;;  %1139 = vmatprep.mubr.msk.f32.mxu1 %vm262_vm1, %v41_v29  ;;  %v857_v57 = vld [vmem:[%s1673_s7] sm:$0xff]  ;;  %v859_v59 = vld [vmem:[%s1673_s7 + $0x10] sm:$0xff]  ;;  %v605_v60 = vld [vmem:[%s1672_s6 + $0x28] sm:$0xff] }
  0x15   :  { %1114 = vmatprep.mubr.msk.f32.mxu0 %vm68_vm0, %v61_v30  ;;  %514 = vperm.xlu1 %1241, %v464_v31   ;;  %v860_v61 = vld [vmem:[%s1673_s7 + $0x18] sm:$0xff]  ;;  %v606_v62 = vld [vmem:[%s1672_s6 + $0x30] sm:$0xff]  ;;  %v861_v63 = vld [vmem:[%s1673_s7 + $0x20] sm:$0xff] }
  0x16   :  { %v607_v0 = vld [vmem:[%s1672_s6 + $0x38] sm:$0xff]  ;;  %v862_v1 = vld [vmem:[%s1673_s7 + $0x28] sm:$0xff]  ;;  %v608_v2 = vld [vmem:[%s1672_s6 + $0x40] sm:$0xff] }
  0x17   :  { %1140 = vmatmul.mubr.msk.f32.gmra.mxu1 %vm262_vm1, %v42_v32  ;;  %509 = vperm.xlu0 %1240, %v463_v33   ;;  %v863_v3 = vld [vmem:[%s1673_s7 + $0x30] sm:$0xff]  ;;  %v609_v4 = vld [vmem:[%s1672_s6 + $0x48] sm:$0xff]  ;;  %v864_v5 = vld [vmem:[%s1673_s7 + $0x38] sm:$0xff] }
  0x18   :  { %1115 = vmatmul.mubr.msk.f32.gmra.mxu0 %vm68_vm0, %v62_v34  ;;  %1142 = vmatprep.mubr.msk.f32.mxu1 %vm262_vm1, %v43_v35  ;;  %v610_v6 = vld [vmem:[%s1672_s6 + $0x50] sm:$0xff]  ;;  %v865_v7 = vld [vmem:[%s1673_s7 + $0x40] sm:$0xff]  ;;  %v611_v8 = vld [vmem:[%s1672_s6 + $0x58] sm:$0xff] }
  0x19   :  { %1117 = vmatprep.mubr.msk.f32.mxu0 %vm68_vm0, %v63_v36  ;;  %504 = vperm.xlu1 %1241, %v462_v37   ;;  %v866_v9 = vld [vmem:[%s1673_s7 + $0x48] sm:$0xff]  ;;  %v612_v10 = vld [vmem:[%s1672_s6 + $0x60] sm:$0xff]  ;;  %v867_v11 = vld [vmem:[%s1673_s7 + $0x50] sm:$0xff] }
  0x1a   :  { %v613_v12 = vld [vmem:[%s1672_s6 + $0x68] sm:$0xff]  ;;  %v868_v13 = vld [vmem:[%s1673_s7 + $0x58] sm:$0xff]  ;;  %v614_v14 = vld [vmem:[%s1672_s6 + $0x70] sm:$0xff] }
  0x1b   :  { %1143 = vmatmul.mubr.msk.f32.gmra.mxu1 %vm262_vm1, %v44_v38  ;;  %499 = vperm.xlu0 %1240, %v461_v39   ;;  %v869_v15 = vld [vmem:[%s1673_s7 + $0x60] sm:$0xff]  ;;  %v615_v16 = vld [vmem:[%s1672_s6 + $0x78] sm:$0xff]  ;;  %v870_v17 = vld [vmem:[%s1673_s7 + $0x68] sm:$0xff] }
  0x1c   :  { %1118 = vmatmul.mubr.msk.f32.gmra.mxu0 %vm68_vm0, %v64_v40  ;;  %1145 = vmatprep.mubr.msk.f32.mxu1 %vm262_vm1, %v45_v41  ;;  %v871_v18 = vld [vmem:[%s1673_s7 + $0x70] sm:$0xff]  ;;  %v872_v19 = vld [vmem:[%s1673_s7 + $0x78] sm:$0xff]  ;;  %v584_v20 = vld [vmem:[%s1674_s5] sm:$0xff] }
  0x1d   :  { %1120 = vmatprep.mubr.msk.f32.mxu0 %vm68_vm0, %v65_v42  ;;  %494 = vperm.xlu1 %1241, %v460_v43   ;;  %v594_v21 = vld [vmem:[%s1674_s5 + $0x50] sm:$0xff] }
  0x1f   :  { %1146 = vmatmul.mubr.msk.f32.gmra.mxu1 %vm262_vm1, %v46_v44  ;;  %489 = vperm.xlu0 %1240, %v459_v45  }
  0x20   :  { %1121 = vmatmul.mubr.msk.f32.gmra.mxu0 %vm68_vm0, %v66_v46  ;;  %1148 = vmatprep.mubr.msk.f32.mxu1 %vm262_vm1, %v47_v47 }
  0x21   :  { %484 = vperm.xlu1 %1241, %v458_v48   ;;  %1183 = vmatprep.mubr.f32.mxu0 %v584_v20 }
  0x23   :  { %1149 = vmatmul.mubr.msk.f32.gmra.mxu1 %vm262_vm1, %v48_v49  ;;  %479 = vperm.xlu0 %1240, %v457_v50  }
  0x24   :  { %1198 = vmatprep.mubr.f32.mxu1 %v594_v21 }
  0x25   :  { %474 = vperm.xlu1 %1241, %v456_v51  }
  0x27   :  { %618 = vperm.xlu0 %1240, %v600_v52  }
  0x29   :  { %623 = vperm.xlu1 %1241, %v601_v53  }
  0x2b   :  { %628 = vperm.xlu0 %1240, %v602_v54  }
  0x2d   :  { %633 = vperm.xlu1 %1241, %v603_v55  }
  0x2f   :  { %638 = vperm.xlu0 %1240, %v604_v56  }
  0x31   :  { %875 = vperm.xlu1 %1241, %v857_v57  }
  0x33   :  { %880 = vperm.xlu0 %1240, %v858_v58  }
  0x35   :  { %885 = vperm.xlu1 %1241, %v859_v59  }
  0x37   :  { %643 = vperm.xlu0 %1240, %v605_v60  }
  0x39   :  { %890 = vperm.xlu1 %1241, %v860_v61  }
  0x3b   :  { %648 = vperm.xlu0 %1240, %v606_v62  }
  0x3d   :  { %895 = vperm.xlu1 %1241, %v861_v63  }
  0x3f   :  { %653 = vperm.xlu0 %1240, %v607_v0  }
  0x41   :  { %900 = vperm.xlu1 %1241, %v862_v1  }
  0x43   :  { %658 = vperm.xlu0 %1240, %v608_v2  }
  0x45   :  { %905 = vperm.xlu1 %1241, %v863_v3  }
  0x47   :  { %663 = vperm.xlu0 %1240, %v609_v4  }
  0x49   :  { %910 = vperm.xlu1 %1241, %v864_v5  }
  0x4b   :  { %668 = vperm.xlu0 %1240, %v610_v6  }
  0x4d   :  { %915 = vperm.xlu1 %1241, %v865_v7  }
  0x4f   :  { %673 = vperm.xlu0 %1240, %v611_v8  }
  0x51   :  { %920 = vperm.xlu1 %1241, %v866_v9  }
  0x53   :  { %678 = vperm.xlu0 %1240, %v612_v10  }
  0x55   :  { %925 = vperm.xlu1 %1241, %v867_v11  }
  0x57   :  { %683 = vperm.xlu0 %1240, %v613_v12  }
  0x59   :  { %930 = vperm.xlu1 %1241, %v868_v13  }
  0x5b   :  { %688 = vperm.xlu0 %1240, %v614_v14  }
  0x5d   :  { %935 = vperm.xlu1 %1241, %v869_v15  }
  0x5f   :  { %693 = vperm.xlu0 %1240, %v615_v16  }
  0x61   :  { %940 = vperm.xlu1 %1241, %v870_v17  }
  0x63   :  { %945 = vperm.xlu0 %1240, %v871_v18  }
  0x65   :  { %950 = vperm.xlu1 %1241, %v872_v19  }
  0x82   :  { %v550_v37 = vpop.permute.xlu0 %549 }
  0x84   :  { %v540_v41 = vpop.permute.xlu1 %539 }
  0x86   :  { %v545_v45 = vpop.permute.xlu0 %544 }
  0x88   :  { %v535_v49 = vpop.permute.xlu1 %534 }
  0x8a   :  { %v530_v53 = vpop.permute.xlu0 %529 }
  0x8c   :  { %v525_v56 = vpop.permute.xlu1 %524 }
  0x8e   :  { %v520_v1 = vpop.permute.xlu0 %519 }
  0x90   :  { %v515_v6 = vpop.permute.xlu1 %514 }
  0x92   :  { %v510_v13 = vpop.permute.xlu0 %509 }
  0x94   :  { %v505_v17 = vpop.permute.xlu1 %504 }
  0xc4   :  { %v1580_v22 = vpop.f32.mrf.mxu0 }
  0xc6   :  { %v1582_v23 = vpop.f32.mrf.mxu0 }
  0xc7   :  { %v1584_v24 = vpop.f32.mrf.mxu1 }
  0xc8   :  { %v1586_v25 = vpop.f32.mrf.mxu0 }
  0xc9   :  { %v1588_v26 = vpop.f32.mrf.mxu1 }
  0xca   :  { %v1590_v27 = vpop.f32.mrf.mxu0 }
  0xcb   :  { %v1592_v28 = vpop.f32.mrf.mxu1 }
  0xcc   :  { %v1594_v29 = vpop.f32.mrf.mxu0 }
  0xcd   :  { %v1596_v30 = vpop.f32.mrf.mxu1 }
  0xce   :  { %v1598_v31 = vpop.f32.mrf.mxu0 }
  0xcf   :  { %v1600_v32 = vpop.f32.mrf.mxu1 }
  0xd0   :  { %v1110_v33 = vpop.f32.mrf.mxu0 }
  0xd1   :  { %v1602_v34 = vpop.f32.mrf.mxu1 }
  0xd2   :  { %v1604_v35 = vpop.f32.mrf.mxu0 }
  0xd3   :  { %v1138_v36 = vpop.f32.mrf.mxu1 }
  0xd4   :  { %v1113_v38 = vpop.f32.mrf.mxu0  ;;  %v413_v18 = vadd.f32 %v1138_v36, %v1110_v33  ;;  %v495_v36 = vpop.permute.xlu1 %494 }
  0xd5   :  { %v407_v39 = vpop.f32.mrf.mxu1 }
  0xd6   :  { %v223_v40 = vpop.f32.mrf.mxu0  ;;  %v408_v21 = vadd.f32 %v407_v39, %v1604_v35  ;;  %v398_v35 = vadd.f32 %v1602_v34, %v1598_v31 }
  0xd7   :  { %v1141_v42 = vpop.f32.mrf.mxu1 }
  0xd8   :  { %v1116_v43 = vpop.f32.mrf.mxu0  ;;  %v423_v10 = vadd.f32 %v1141_v42, %v1113_v38  ;;  %v559_v42 = vadd.f32 %v510_v13, %v413_v18  ;;  %v558_v39 = vadd.f32 %v505_v17, %v408_v21  ;;  %v556_v31 = vadd.f32 %v495_v36, %v398_v35 }
  0xd9   :  { %v417_v44 = vpop.f32.mrf.mxu1 }
  0xda   :  { %v233_v46 = vpop.f32.mrf.mxu0  ;;  %v418_v14 = vadd.f32 %v417_v44, %v223_v40  ;;  %v561_v19 = vadd.f32 %v520_v1, %v423_v10  ;;  %v500_v40 = vpop.permute.xlu0 %499  ;;  %v393_v44 = vadd.f32 %v1592_v28, %v1586_v25  ;;  %v574_v34 = vmax.f32 %v558_v39, 0.0  ;;  %v591_v1 = vld [vmem:[%s1674_s5 + $0x38] sm:$0xff] }
  0xdb   :  { %v1144_v47 = vpop.f32.mrf.mxu1  ;;  %v383_v25 = vadd.f32 %v1584_v24, %v1580_v22 }
  0xdc   :  { %v1119_v48 = vpop.f32.mrf.mxu0  ;;  %v433_v2 = vadd.f32 %v1144_v47, %v1116_v43  ;;  %v577_v33 = vmax.f32 %v561_v19, 0.0  ;;  %v485_v47 = vpop.permute.xlu1 %484 }
  0xdd   :  { %v427_v50 = vpop.f32.mrf.mxu1 }
  0xde   :  { %v243_v51 = vpop.f32.mrf.mxu0  ;;  %v428_v7 = vadd.f32 %v427_v50, %v233_v46  ;;  %v563_v11 = vadd.f32 %v530_v53, %v433_v2  ;;  %v388_v46 = vadd.f32 %v1596_v30, %v1590_v27  ;;  %v572_v30 = vmax.f32 %v556_v31, 0.0  ;;  %v592_v2 = vld [vmem:[%s1674_s5 + $0x40] sm:$0xff] }
  0xdf   :  { %v1147_v52 = vpop.f32.mrf.mxu1 }
  0xe0   :  { %v1122_v54 = vpop.f32.mrf.mxu0  ;;  %v443_v58 = vadd.f32 %v1147_v52, %v1119_v48  ;;  %v562_v15 = vadd.f32 %v525_v56, %v428_v7  ;;  %v579_v20 = vmax.f32 %v563_v11, 0.0  ;;  %v554_v27 = vadd.f32 %v485_v47, %v388_v46  ;;  %v475_v22 = vpop.permute.xlu1 %474  ;;  %v586_v56 = vld [vmem:[%s1674_s5 + $0x10] sm:$0xff] }
  0xe1   :  { %v437_v55 = vpop.f32.mrf.mxu1 }
  0xe2   :  { %v253_v60 = vpop.f32.mrf.mxu0  ;;  %v438_v62 = vadd.f32 %v437_v55, %v243_v51  ;;  %v565_v3 = vadd.f32 %v540_v41, %v443_v58  ;;  %v578_v38 = vmax.f32 %v562_v15, 0.0  ;;  %v403_v41 = vadd.f32 %v1600_v32, %v1594_v29  ;;  %v595_v55 = vld [vmem:[%s1674_s5 + $0x58] sm:$0xff] }
  0xe3   :  { %v1150_v57 = vpop.f32.mrf.mxu1  ;;  %v575_v32 = vmax.f32 %v559_v42, 0.0  ;;  %v570_v53 = vmax.f32 %v554_v27, 0.0  ;;  %v587_v58 = vld [vmem:[%s1674_s5 + $0x18] sm:$0xff] }
  0xe4   :  { %v453_v59 = vadd.f32 %v1150_v57, %v1122_v54  ;;  %v564_v8 = vadd.f32 %v535_v49, %v438_v62  ;;  %v581_v12 = vmax.f32 %v565_v3, 0.0  ;;  %v557_v29 = vadd.f32 %v500_v40, %v403_v41  ;;  %v585_v54 = vld [vmem:[%s1674_s5 + $0x8] sm:$0xff]  ;;  %v596_v57 = vld [vmem:[%s1674_s5 + $0x60] sm:$0xff] }
  0xe5   :  { %v447_v61 = vpop.f32.mrf.mxu1  ;;  %v378_v49 = vadd.f32 %v1588_v26, %v1582_v23  ;;  %v589_v62 = vld [vmem:[%s1674_s5 + $0x28] sm:$0xff] }
  0xe6   :  { %v567_v63 = vadd.f32 %v550_v37, %v453_v59  ;;  %v448_v0 = vadd.f32 %v447_v61, %v253_v60  ;;  %v580_v16 = vmax.f32 %v564_v8, 0.0  ;;  %v560_v37 = vadd.f32 %v515_v6, %v418_v14  ;;  %v597_v59 = vld [vmem:[%s1674_s5 + $0x68] sm:$0xff]  ;;  %v588_v60 = vld [vmem:[%s1674_s5 + $0x20] sm:$0xff]  ;;  %v598_v61 = vld [vmem:[%s1674_s5 + $0x70] sm:$0xff] }
  0xe7   :  { %v573_v48 = vmax.f32 %v557_v29, 0.0  ;;  %v552_v24 = vadd.f32 %v475_v22, %v378_v49  ;;  %v593_v3 = vld [vmem:[%s1674_s5 + $0x48] sm:$0xff] }
  0xe8   :  { %v583_v4 = vmax.f32 %v567_v63, 0.0  ;;  %v566_v5 = vadd.f32 %v545_v45, %v448_v0  ;;  %v576_v43 = vmax.f32 %v560_v37, 0.0  ;;  %v490_v45 = vpop.permute.xlu0 %489  ;;  %v599_v63 = vld [vmem:[%s1674_s5 + $0x78] sm:$0xff]  ;;  %v590_v0 = vld [vmem:[%s1674_s5 + $0x30] sm:$0xff] }
  0xe9   :  { %v555_v28 = vadd.f32 %v490_v45, %v393_v44  ;;  %v568_v26 = vmax.f32 %v552_v24, 0.0 }
  0xea   :  { %v582_v9 = vmax.f32 %v566_v5, 0.0  ;;  %1151 = vmatprep.subr.mxu0 %v583_v4  ;;  %1207 = vmatprep.subr.mxu1 %v583_v4  ;;  %v624_v5 = vpop.permute.xlu1 %623 }
  0xeb   :  { %1152 = vmatpush3.msra.mxu0 %v583_v4  ;;  %1223 = vmatpush3.msra.mxu1 %v583_v4  ;;  %v571_v52 = vmax.f32 %v555_v28, 0.0 }
  0xec   :  { %1153 = vmatprep.subr.mxu0 %v582_v9  ;;  %1208 = vmatprep.subr.mxu1 %v582_v9  ;;  %v480_v50 = vpop.permute.xlu0 %479 }
  0xed   :  { %1154 = vmatpush3.msra.mxu0 %v582_v9  ;;  %1224 = vmatpush3.msra.mxu1 %v582_v9  ;;  %v553_v51 = vadd.f32 %v480_v50, %v383_v25 }
  0xee   :  { %1155 = vmatprep.subr.mxu0 %v581_v12  ;;  %1209 = vmatprep.subr.mxu1 %v581_v12  ;;  %v634_v7 = vpop.permute.xlu1 %633 }
  0xef   :  { %1156 = vmatpush3.msra.mxu0 %v581_v12  ;;  %1225 = vmatpush3.msra.mxu1 %v581_v12  ;;  %v569_v23 = vmax.f32 %v553_v51, 0.0 }
  0xf0   :  { %1157 = vmatprep.subr.mxu0 %v580_v16  ;;  %1210 = vmatprep.subr.mxu1 %v580_v16  ;;  %v619_v4 = vpop.permute.xlu0 %618 }
  0xf1   :  { %1158 = vmatpush3.msra.mxu0 %v580_v16  ;;  %1226 = vmatpush3.msra.mxu1 %v580_v16 }
  0xf2   :  { %1159 = vmatprep.subr.mxu0 %v579_v20  ;;  %1211 = vmatprep.subr.mxu1 %v579_v20  ;;  %v876_v9 = vpop.permute.xlu1 %875 }
  0xf3   :  { %1160 = vmatpush3.msra.mxu0 %v579_v20  ;;  %1227 = vmatpush3.msra.mxu1 %v579_v20 }
  0xf4   :  { %1161 = vmatprep.subr.mxu0 %v578_v38  ;;  %1212 = vmatprep.subr.mxu1 %v578_v38  ;;  %v629_v6 = vpop.permute.xlu0 %628 }
  0xf5   :  { %1162 = vmatpush3.msra.mxu0 %v578_v38  ;;  %1228 = vmatpush3.msra.mxu1 %v578_v38 }
  0xf6   :  { %1163 = vmatprep.subr.mxu0 %v577_v33  ;;  %1213 = vmatprep.subr.mxu1 %v577_v33  ;;  %v886_v11 = vpop.permute.xlu1 %885 }
  0xf7   :  { %1164 = vmatpush3.msra.mxu0 %v577_v33  ;;  %1229 = vmatpush3.msra.mxu1 %v577_v33 }
  0xf8   :  { %1165 = vmatprep.subr.mxu0 %v576_v43  ;;  %1214 = vmatprep.subr.mxu1 %v576_v43  ;;  %v639_v8 = vpop.permute.xlu0 %638 }
  0xf9   :  { %1166 = vmatpush3.msra.mxu0 %v576_v43  ;;  %1230 = vmatpush3.msra.mxu1 %v576_v43 }
  0xfa   :  { %1167 = vmatprep.subr.mxu0 %v575_v32  ;;  %1215 = vmatprep.subr.mxu1 %v575_v32  ;;  %v891_v13 = vpop.permute.xlu1 %890 }
  0xfb   :  { %1168 = vmatpush3.msra.mxu0 %v575_v32  ;;  %1231 = vmatpush3.msra.mxu1 %v575_v32 }
  0xfc   :  { %1169 = vmatprep.subr.mxu0 %v574_v34  ;;  %1216 = vmatprep.subr.mxu1 %v574_v34  ;;  %v881_v10 = vpop.permute.xlu0 %880 }
  0xfd   :  { %1170 = vmatpush3.msra.mxu0 %v574_v34  ;;  %1232 = vmatpush3.msra.mxu1 %v574_v34 }
  0xfe   :  { %1171 = vmatprep.subr.mxu0 %v573_v48  ;;  %1217 = vmatprep.subr.mxu1 %v573_v48  ;;  %v896_v15 = vpop.permute.xlu1 %895 }
  0xff   :  { %1172 = vmatpush3.msra.mxu0 %v573_v48  ;;  %1233 = vmatpush3.msra.mxu1 %v573_v48 }
 0x100   :  { %1173 = vmatprep.subr.mxu0 %v572_v30  ;;  %1218 = vmatprep.subr.mxu1 %v572_v30  ;;  %v644_v12 = vpop.permute.xlu0 %643 }
 0x101   :  { %1174 = vmatpush3.msra.mxu0 %v572_v30  ;;  %1234 = vmatpush3.msra.mxu1 %v572_v30 }
 0x102   :  { %1175 = vmatprep.subr.mxu0 %v571_v52  ;;  %1219 = vmatprep.subr.mxu1 %v571_v52  ;;  %v901_v17 = vpop.permute.xlu1 %900 }
 0x103   :  { %1176 = vmatpush3.msra.mxu0 %v571_v52  ;;  %1235 = vmatpush3.msra.mxu1 %v571_v52 }
 0x104   :  { %1177 = vmatprep.subr.mxu0 %v570_v53  ;;  %1220 = vmatprep.subr.mxu1 %v570_v53  ;;  %v649_v14 = vpop.permute.xlu0 %648 }
 0x105   :  { %1178 = vmatpush3.msra.mxu0 %v570_v53  ;;  %1236 = vmatpush3.msra.mxu1 %v570_v53 }
 0x106   :  { %1179 = vmatprep.subr.mxu0 %v569_v23  ;;  %1221 = vmatprep.subr.mxu1 %v569_v23  ;;  %v906_v19 = vpop.permute.xlu1 %905 }
 0x107   :  { %1180 = vmatpush3.msra.mxu0 %v569_v23  ;;  %1237 = vmatpush3.msra.mxu1 %v569_v23 }
 0x108   :  { %1181 = vmatprep.subr.mxu0 %v568_v26  ;;  %1222 = vmatprep.subr.mxu1 %v568_v26  ;;  %v654_v16 = vpop.permute.xlu0 %653 }
 0x109   :  { %1182 = vmatpush3.msra.mxu0 %v568_v26  ;;  %1238 = vmatpush3.msra.mxu1 %v568_v26 }
 0x10a   :  { %1184 = vmatmul.mubr.f32.vlgmr.msra.gmra.mxu0 %v585_v54  ;;  %1199 = vmatmul.mubr.f32.vlgmr.msra.gmra.mxu1 %v595_v55  ;;  %v911_v21 = vpop.permute.xlu1 %910 }
 0x10b   :  { %1186 = vmatprep.mubr.f32.mxu0 %v586_v56  ;;  %1201 = vmatprep.mubr.f32.mxu1 %v596_v57 }
 0x10c   :  { %v659_v18 = vpop.permute.xlu0 %658 }
 0x10e   :  { %1187 = vmatmul.mubr.f32.gmra.mxu0 %v587_v58  ;;  %1202 = vmatmul.mubr.f32.gmra.mxu1 %v597_v59  ;;  %v916_v38 = vpop.permute.xlu1 %915 }
 0x10f   :  { %1189 = vmatprep.mubr.f32.mxu0 %v588_v60  ;;  %1204 = vmatprep.mubr.f32.mxu1 %v598_v61 }
 0x110   :  { %v664_v20 = vpop.permute.xlu0 %663 }
 0x112   :  { %1190 = vmatmul.mubr.f32.gmra.mxu0 %v589_v62  ;;  %1205 = vmatmul.mubr.f32.gmra.mxu1 %v599_v63  ;;  %v921_v43 = vpop.permute.xlu1 %920 }
 0x113   :  { %1192 = vmatprep.mubr.f32.mxu0 %v590_v0 }
 0x114   :  { %v669_v37 = vpop.permute.xlu0 %668 }
 0x116   :  { %1193 = vmatmul.mubr.f32.gmra.mxu0 %v591_v1  ;;  %v926_v50 = vpop.permute.xlu1 %925 }
 0x117   :  { %1195 = vmatprep.mubr.f32.mxu0 %v592_v2 }
 0x118   :  { %v674_v33 = vpop.permute.xlu0 %673 }
 0x11a   :  { %1196 = vmatmul.mubr.f32.gmra.mxu0 %v593_v3 }
 0x11c   :  { %v679_v25 = vpop.permute.xlu0 %678 }
 0x120   :  { %v684_v58 = vpop.permute.xlu0 %683 }
 0x1ca   :  { %v1185_v40 = vpop.f32.mrf.mxu0  ;;  %v1200_v35 = vpop.f32.mrf.mxu1 }
 0x1cb   :  { %v768_v41 = vadd.f32 %v1185_v40, %v624_v5  ;;  %v931_v5 = vpop.permute.xlu1 %930 }
 0x1cc   :  { %v762_v42 = vpop.f32.mrf.mxu0  ;;  %v812_v34 = vpop.f32.mrf.mxu1 }
 0x1cd   :  { %v763_v36 = vadd.f32 %v762_v42, %v619_v4  ;;  %v842_v44 = vmax.f32 %v768_v41, 0.0 }
 0x1ce   :  { %v1188_v39 = vpop.f32.mrf.mxu0  ;;  %v1203_v24 = vpop.f32.mrf.mxu1 }
 0x1cf   :  { %v841_v29 = vmax.f32 %v763_v36, 0.0  ;;  %v778_v32 = vadd.f32 %v1188_v39, %v634_v7  ;;  %v954_v28 = vmul.f32 %v881_v10, %v842_v44  ;;  %v813_v7 = vadd.f32 %v812_v34, %v669_v37  ;;  %v936_v39 = vpop.permute.xlu1 %935 }
 0x1d0   :  { %v772_v45 = vpop.f32.mrf.mxu0  ;;  %v822_v62 = vpop.f32.mrf.mxu1 }
 0x1d1   :  { %v953_v46 = vmul.f32 %v876_v9, %v841_v29  ;;  %v773_v31 = vadd.f32 %v772_v45, %v629_v6  ;;  %v844_v48 = vmax.f32 %v778_v32, 0.0  ;;  %v851_v41 = vmax.f32 %v813_v7, 0.0 }
 0x1d2   :  { %v1191_v47 = vpop.f32.mrf.mxu0  ;;  %v828_v29 = vadd.f32 %v1203_v24, %v684_v58 }
 0x1d3   :  { %v843_v49 = vmax.f32 %v773_v31, 0.0  ;;  %v788_v27 = vadd.f32 %v1191_v47, %v644_v12  ;;  %v969_v51 = vadd.f32 %v954_v28, %v953_v46  ;;  %v956_v26 = vmul.f32 %v891_v13, %v844_v48  ;;  %v1206_v12 = vpop.f32.mrf.mxu1  ;;  %v941_v47 = vpop.permute.xlu1 %940 }
 0x1d4   :  { %v782_v30 = vpop.f32.mrf.mxu0  ;;  %v854_v46 = vmax.f32 %v828_v29, 0.0 }
 0x1d5   :  { %v955_v52 = vmul.f32 %v886_v11, %v843_v49  ;;  %v783_v22 = vadd.f32 %v782_v30, %v639_v8  ;;  %v846_v53 = vmax.f32 %v788_v27, 0.0  ;;  %v818_v11 = vadd.f32 %v1200_v35, %v674_v33  ;;  %v832_v44 = vpop.f32.mrf.mxu1 }
 0x1d6   :  { %v1194_v23 = vpop.f32.mrf.mxu0  ;;  %v966_v48 = vmul.f32 %v941_v47, %v854_v46 }
 0x1d7   :  { %v970_v54 = vadd.f32 %v969_v51, %v955_v52  ;;  %v845_v55 = vmax.f32 %v783_v22, 0.0  ;;  %v798_v56 = vadd.f32 %v1194_v23, %v654_v16  ;;  %v958_v63 = vmul.f32 %v901_v17, %v846_v53  ;;  %v951_v52 = vpop.permute.xlu1 %950 }
 0x1d8   :  { %v792_v57 = vpop.f32.mrf.mxu0  ;;  %v823_v17 = vadd.f32 %v822_v62, %v679_v25 }
 0x1d9   :  { %v957_v59 = vmul.f32 %v896_v15, %v845_v55  ;;  %v971_v60 = vadd.f32 %v970_v54, %v956_v26  ;;  %v793_v61 = vadd.f32 %v792_v57, %v649_v14  ;;  %v848_v2 = vmax.f32 %v798_v56, 0.0  ;;  %v689_v14 = vpop.permute.xlu0 %688 }
 0x1da   :  { %v1197_v0 = vpop.f32.mrf.mxu0  ;;  %v853_v45 = vmax.f32 %v823_v17, 0.0  ;;  %v991_v56 = vstv %s1675_s8 }
 0x1db   :  { %v972_v1 = vadd.f32 %v971_v60, %v957_v59  ;;  %v847_v3 = vmax.f32 %v793_v61, 0.0  ;;  %v808_v4 = vadd.f32 %v1197_v0, %v664_v20  ;;  %v960_v13 = vmul.f32 %v911_v21, %v848_v2 }
 0x1dc   :  { %v802_v6 = vpop.f32.mrf.mxu0  ;;  %v852_v20 = vmax.f32 %v818_v11, 0.0  ;;  %v965_v28 = vmul.f32 %v936_v39, %v853_v45 }
 0x1dd   :  { %v959_v8 = vmul.f32 %v906_v19, %v847_v3  ;;  %v973_v9 = vadd.f32 %v972_v1, %v958_v63  ;;  %v803_v10 = vadd.f32 %v802_v6, %v659_v18  ;;  %v850_v15 = vmax.f32 %v808_v4, 0.0  ;;  %v694_v35 = vpop.permute.xlu0 %693 }
 0x1de   :  { %v963_v19 = vmul.f32 %v926_v50, %v851_v41  ;;  %v833_v18 = vadd.f32 %v832_v44, %v689_v14  ;;  %v964_v21 = vmul.f32 %v931_v5, %v852_v20  ;;  %v838_v31 = vadd.f32 %v1206_v12, %v694_v35 }
 0x1df   :  { %v974_v16 = vadd.f32 %v973_v9, %v959_v8  ;;  %v849_v40 = vmax.f32 %v803_v10, 0.0  ;;  %v962_v32 = vmul.f32 %v921_v43, %v850_v15 }
 0x1e0   :  { %v855_v25 = vmax.f32 %v833_v18, 0.0  ;;  %v856_v49 = vmax.f32 %v838_v31, 0.0 }
 0x1e1   :  { %v961_v42 = vmul.f32 %v916_v38, %v849_v40  ;;  %v975_v36 = vadd.f32 %v974_v16, %v960_v13  ;;  %v946_v30 = vpop.permute.xlu0 %945 }
 0x1e2   :  { %v967_v51 = vmul.f32 %v946_v30, %v855_v25  ;;  %v968_v50 = vmul.f32 %v951_v52, %v856_v49 }
 0x1e3   :  { %v976_v37 = vadd.f32 %v975_v36, %v961_v42 }
 0x1e5   :  { %v977_v33 = vadd.f32 %v976_v37, %v962_v32 }
 0x1e7   :  { %v978_v34 = vadd.f32 %v977_v33, %v963_v19 }
 0x1e9   :  { %v979_v38 = vadd.f32 %v978_v34, %v964_v21 }
 0x1eb   :  { %v980_v27 = vadd.f32 %v979_v38, %v965_v28 }
 0x1ed   :  { %v981_v43 = vadd.f32 %v980_v27, %v966_v48 }
 0x1ef   :  { %v982_v22 = vadd.f32 %v981_v43, %v967_v51 }
 0x1f1   :  { %v983_v24 = vadd.f32 %v982_v22, %v968_v50 }
 0x1f3   :  { %v984_v53 = vrot.slane %v983_v24, 4 }
 0x1f5   :  { %v985_v23 = vadd.f32 %v984_v53, %v983_v24 }
 0x1f7   :  { %v986_v26 = vrot.slane %v985_v23, 2 }
 0x1f9   :  { %v987_v54 = vadd.f32 %v986_v26, %v985_v23 }
 0x1fb   :  { %v988_v55 = vrot.slane %v987_v54, 1 }
 0x1fd   :  { %v989_v57 = vadd.f32 %v988_v55, %v987_v54 }
 0x1ff   :  { %v992_v58 = vadd.f32 %v991_v56, %v989_v57 }
 0x201   :  { %993 = vst [vmem:[%s1676_s9] sm:$0x1] %v992_v58 }

</bundles_post_ra>
